<compile_context>
chip_gen: v7x
topology: tpu7x:2x2x1
jax: 0.10.0
libtpu: 0.0.40
codegen_flags: <defaults>
</compile_context>

<pallas_src>
import functools

import jax
import jax.numpy as jnp
from jax.experimental import pallas as pl
from jax.experimental.pallas import tpu as pltpu


def _fused_mlp_kernel(x_ref, *refs, num_linears):
    """Whole MLP on one VMEM-resident batch tile: chained x @ W + b (+ ReLU)."""
    w_refs = refs[:num_linears]                      # bf16, VMEM-resident
    b_refs = refs[num_linears:2 * num_linears]       # f32 (1, out_l)
    o_ref = refs[2 * num_linears]

    h = x_ref[...]                                   # f32 (tm, in_dim)
    for l in range(num_linears):
        w = w_refs[l][...]
        b = b_refs[l][...]                           # (1, out_l) broadcasts over rows
        # bf16 dot inputs, f32 MXU accumulate; bias add / ReLU stay f32 (VPU).
        h = jnp.dot(h.astype(w.dtype), w, preferred_element_type=jnp.float32) + b
        if l < num_linears - 1:
            h = jnp.maximum(h, 0.0)                  # ReLU
            # Dropout(p) in eval mode is the identity -> nothing to do.
    o_ref[...] = h.astype(o_ref.dtype)


def neural_network_forward(x, params, *, batch_tile=512, weight_dtype=jnp.bfloat16):
    """Fused forward pass.

    x: (B, input_dim) f32; params: list of (w (in, out) f32, b (out,) f32).
    One pallas_call for the whole network. Weights/biases are VMEM-resident
    (single copy) while batch tiles stream; intermediates never touch HBM.
    """
    B, in_dim = x.shape
    num_linears = len(params)
    final_out = params[-1][0].shape[1]

    # Lane-dense output width: pad the final layer to a multiple of 128 columns
    # so the output store is unmasked; slice back after the call.
    out_pad = max(128, ((final_out + 127) // 128) * 128)

    ws, bs = [], []
    for l, (w, b) in enumerate(params):
        if l == num_linears - 1 and w.shape[1] != out_pad:
            w = jnp.pad(w, ((0, 0), (0, out_pad - w.shape[1])))
            b = jnp.pad(b, (0, out_pad - b.shape[0]))
        ws.append(w.astype(weight_dtype))
        bs.append(b.reshape(1, -1).astype(jnp.float32))

    # Batch tiling: single block for small B, otherwise stream tm-row tiles.
    # Keep tm a multiple of 8 (sublane granule); sweep batch_tile per gen.
    if B <= batch_tile:
        tm = B
    else:
        tm = max(8, (batch_tile // 8) * 8)
    grid = (pl.cdiv(B, tm),)

    # Weights/biases: untiled, whole-array VMEM operands (no per-step DMA, no
    # double-buffering of constant blocks).
    resident = pl.BlockSpec(memory_space=pltpu.MemorySpace.VMEM)
    in_specs = [pl.BlockSpec((tm, in_dim), lambda i: (i, 0))]
    in_specs += [resident] * (2 * num_linears)

    # Explicit VMEM budget: resident weights + double-buffered x/out tiles +
    # live intermediate, with 2x margin.  Capped at 64 MiB so the same config
    # stays legal on v7x (64 MiB physical); raise toward ~100 MiB on v6e/v5e
    # only if the resident-weight strategy needs it.
    weight_bytes = sum(int(w.size) * w.dtype.itemsize for w in ws)
    bias_bytes = sum(int(b.size) * 4 for b in bs)
    act_bytes = 2 * tm * in_dim * 4 + 2 * tm * out_pad * 4
    max_width = max(w.shape[1] for w in ws)
    live_h_bytes = 2 * tm * max_width * 4
    vmem_limit = int(
        min(64 * 1024 * 1024,
            max(32 * 1024 * 1024,
                2 * (weight_bytes + bias_bytes + act_bytes + live_h_bytes)))
    )

    kernel = functools.partial(_fused_mlp_kernel, num_linears=num_linears)

    out = pl.pallas_call(
        kernel,
        out_shape=jax.ShapeDtypeStruct((B, out_pad), x.dtype),
        grid=grid,
        in_specs=in_specs,
        out_specs=pl.BlockSpec((tm, out_pad), lambda i: (i, 0)),
        compiler_params=pltpu.CompilerParams(
            # Batch axis shards across v7x's 2 TensorCores only when grid > 1.
            dimension_semantics=("parallel",),
            vmem_limit_bytes=vmem_limit,
        ),
    )(x, *ws, *bs)

    return out[:, :final_out]


def init_params(key, input_dim, output_dim, hidden_size, num_layers):
    """Deterministic init mimicking nn.Linear's U(-1/sqrt(fan_in), 1/sqrt(fan_in))."""
    dims = [input_dim] + [hidden_size] * num_layers + [output_dim]
    params = []
    for i in range(len(dims) - 1):
        fan_in, fan_out = dims[i], dims[i + 1]
        key, kw, kb = jax.random.split(key, 3)
        bound = 1.0 / (fan_in ** 0.5)
        w = jax.random.uniform(kw, (fan_in, fan_out), jnp.float32, -bound, bound)
        b = jax.random.uniform(kb, (fan_out,), jnp.float32, -bound, bound)
        params.append((w, b))
    return params


if __name__ == "__main__":
    # Small shapes consistent with the module's forward.
    batch = 8
    input_dim = 16
    output_dim = 8
    hidden_size = 32
    num_layers = 3

    key = jax.random.PRNGKey(0)
    key, kx = jax.random.split(key)
    x = jax.random.normal(kx, (batch, input_dim), jnp.float32)

    params = init_params(key, input_dim, output_dim, hidden_size, num_layers)

    out = neural_network_forward(x, params)
    out = jax.block_until_ready(out)
    assert out.shape == (batch, output_dim), out.shape

    # Pure-JAX reference with the same bf16 dot inputs / f32 accumulation
    # (eval-mode dropout == identity).  bf16 quantization is expected, so the
    # tolerance is looser than exact-f32.
    ref = x
    for i, (w, b) in enumerate(params):
        ref = jnp.dot(ref.astype(jnp.bfloat16), w.astype(jnp.bfloat16),
                      preferred_element_type=jnp.float32) + b
        if i != len(params) - 1:
            ref = jnp.maximum(ref, 0.0)
    assert jnp.allclose(out, ref, atol=2e-3, rtol=2e-3), (
        float(jnp.max(jnp.abs(out - ref))))

    print("KERNEL_OK")
</pallas_src>

<mosaic_0001>
module attributes {stable_mosaic.version = 11 : i64} {
  func.func @_fused_mlp_kernel(%arg0: i32, %arg1: memref<8x16xf32, #tpu.memory_space<vmem>>, %arg2: memref<16x32xbf16, #tpu.memory_space<vmem>>, %arg3: memref<32x32xbf16, #tpu.memory_space<vmem>>, %arg4: memref<32x32xbf16, #tpu.memory_space<vmem>>, %arg5: memref<32x128xbf16, #tpu.memory_space<vmem>>, %arg6: memref<1x32xf32, #tpu.memory_space<vmem>>, %arg7: memref<1x32xf32, #tpu.memory_space<vmem>>, %arg8: memref<1x32xf32, #tpu.memory_space<vmem>>, %arg9: memref<1x128xf32, #tpu.memory_space<vmem>>, %arg10: memref<8x128xf32, #tpu.memory_space<vmem>>) attributes {dimension_semantics = [#tpu.dimension_semantics<parallel>], iteration_bounds = array<i64: 1>, scalar_prefetch = 0 : i64, scratch_operands = 0 : i64, tpu.core_type = #tpu.core_type<tc>, window_params = [{transform_indices = @transform_0, window_bounds = array<i64: 8, 16>}, {pipeline_mode = #tpu.pipeline_mode<synchronous>, transform_indices = @transform_1, window_bounds = array<i64: 16, 32>}, {pipeline_mode = #tpu.pipeline_mode<synchronous>, transform_indices = @transform_2, window_bounds = array<i64: 32, 32>}, {pipeline_mode = #tpu.pipeline_mode<synchronous>, transform_indices = @transform_3, window_bounds = array<i64: 32, 32>}, {pipeline_mode = #tpu.pipeline_mode<synchronous>, transform_indices = @transform_4, window_bounds = array<i64: 32, 128>}, {pipeline_mode = #tpu.pipeline_mode<synchronous>, transform_indices = @transform_5, window_bounds = array<i64: 1, 32>}, {pipeline_mode = #tpu.pipeline_mode<synchronous>, transform_indices = @transform_6, window_bounds = array<i64: 1, 32>}, {pipeline_mode = #tpu.pipeline_mode<synchronous>, transform_indices = @transform_7, window_bounds = array<i64: 1, 32>}, {pipeline_mode = #tpu.pipeline_mode<synchronous>, transform_indices = @transform_8, window_bounds = array<i64: 1, 128>}, {transform_indices = @transform_9, window_bounds = array<i64: 8, 128>}]} {
    %c0 = arith.constant 0 : index
    %c0_0 = arith.constant 0 : index
    %0 = vector.load %arg1[%c0, %c0_0] : memref<8x16xf32, #tpu.memory_space<vmem>>, vector<8x16xf32>
    %c0_1 = arith.constant 0 : index
    %c0_2 = arith.constant 0 : index
    %1 = vector.load %arg2[%c0_1, %c0_2] : memref<16x32xbf16, #tpu.memory_space<vmem>>, vector<16x32xbf16>
    %c0_3 = arith.constant 0 : index
    %c0_4 = arith.constant 0 : index
    %2 = vector.load %arg6[%c0_3, %c0_4] : memref<1x32xf32, #tpu.memory_space<vmem>>, vector<1x32xf32>
    %3 = arith.truncf %0 : vector<8x16xf32> to vector<8x16xbf16>
    %cst = arith.constant dense<0.000000e+00> : vector<8x32xf32>
    %4 = tpu.matmul %3, %1, %cst {dimension_numbers = #tpu.dot_dimension_numbers<[1], [0], [0], [1], [0, 0, 1, 1], [], []>} : vector<8x16xbf16>, vector<16x32xbf16>, vector<8x32xf32> -> vector<8x32xf32>
    %5 = vector.broadcast %2 : vector<1x32xf32> to vector<8x32xf32>
    %6 = arith.addf %4, %5 : vector<8x32xf32>
    %cst_5 = arith.constant 0.000000e+00 : f32
    %7 = vector.broadcast %cst_5 : f32 to vector<8x32xf32>
    %8 = arith.maximumf %6, %7 : vector<8x32xf32>
    %c0_6 = arith.constant 0 : index
    %c0_7 = arith.constant 0 : index
    %9 = vector.load %arg3[%c0_6, %c0_7] : memref<32x32xbf16, #tpu.memory_space<vmem>>, vector<32x32xbf16>
    %c0_8 = arith.constant 0 : index
    %c0_9 = arith.constant 0 : index
    %10 = vector.load %arg7[%c0_8, %c0_9] : memref<1x32xf32, #tpu.memory_space<vmem>>, vector<1x32xf32>
    %11 = arith.truncf %8 : vector<8x32xf32> to vector<8x32xbf16>
    %cst_10 = arith.constant dense<0.000000e+00> : vector<8x32xf32>
    %12 = tpu.matmul %11, %9, %cst_10 {dimension_numbers = #tpu.dot_dimension_numbers<[1], [0], [0], [1], [0, 0, 1, 1], [], []>} : vector<8x32xbf16>, vector<32x32xbf16>, vector<8x32xf32> -> vector<8x32xf32>
    %13 = vector.broadcast %10 : vector<1x32xf32> to vector<8x32xf32>
    %14 = arith.addf %12, %13 : vector<8x32xf32>
    %cst_11 = arith.constant 0.000000e+00 : f32
    %15 = vector.broadcast %cst_11 : f32 to vector<8x32xf32>
    %16 = arith.maximumf %14, %15 : vector<8x32xf32>
    %c0_12 = arith.constant 0 : index
    %c0_13 = arith.constant 0 : index
    %17 = vector.load %arg4[%c0_12, %c0_13] : memref<32x32xbf16, #tpu.memory_space<vmem>>, vector<32x32xbf16>
    %c0_14 = arith.constant 0 : index
    %c0_15 = arith.constant 0 : index
    %18 = vector.load %arg8[%c0_14, %c0_15] : memref<1x32xf32, #tpu.memory_space<vmem>>, vector<1x32xf32>
    %19 = arith.truncf %16 : vector<8x32xf32> to vector<8x32xbf16>
    %cst_16 = arith.constant dense<0.000000e+00> : vector<8x32xf32>
    %20 = tpu.matmul %19, %17, %cst_16 {dimension_numbers = #tpu.dot_dimension_numbers<[1], [0], [0], [1], [0, 0, 1, 1], [], []>} : vector<8x32xbf16>, vector<32x32xbf16>, vector<8x32xf32> -> vector<8x32xf32>
    %21 = vector.broadcast %18 : vector<1x32xf32> to vector<8x32xf32>
    %22 = arith.addf %20, %21 : vector<8x32xf32>
    %cst_17 = arith.constant 0.000000e+00 : f32
    %23 = vector.broadcast %cst_17 : f32 to vector<8x32xf32>
    %24 = arith.maximumf %22, %23 : vector<8x32xf32>
    %c0_18 = arith.constant 0 : index
    %c0_19 = arith.constant 0 : index
    %25 = vector.load %arg5[%c0_18, %c0_19] : memref<32x128xbf16, #tpu.memory_space<vmem>>, vector<32x128xbf16>
    %c0_20 = arith.constant 0 : index
    %c0_21 = arith.constant 0 : index
    %26 = vector.load %arg9[%c0_20, %c0_21] : memref<1x128xf32, #tpu.memory_space<vmem>>, vector<1x128xf32>
    %27 = arith.truncf %24 : vector<8x32xf32> to vector<8x32xbf16>
    %cst_22 = arith.constant dense<0.000000e+00> : vector<8x128xf32>
    %28 = tpu.matmul %27, %25, %cst_22 {dimension_numbers = #tpu.dot_dimension_numbers<[1], [0], [0], [1], [0, 0, 1, 1], [], []>} : vector<8x32xbf16>, vector<32x128xbf16>, vector<8x128xf32> -> vector<8x128xf32>
    %29 = vector.broadcast %26 : vector<1x128xf32> to vector<8x128xf32>
    %30 = arith.addf %28, %29 : vector<8x128xf32>
    %c0_23 = arith.constant 0 : index
    %c0_24 = arith.constant 0 : index
    %31 = vector.load %arg10[%c0_23, %c0_24] : memref<8x128xf32, #tpu.memory_space<vmem>>, vector<8x128xf32>
    tpu.vector_store %arg10[%c0_23, %c0_24], %30 {strides = array<i32>} : memref<8x128xf32, #tpu.memory_space<vmem>>, vector<8x128xf32>,
    return
  }
  func.func @transform_0(%arg0: i32) -> (i32, i32) {
    %c0_i32 = arith.constant 0 : i32
    %c0_i32_0 = arith.constant 0 : i32
    return %arg0, %c0_i32 : i32, i32
  }
  func.func @transform_1(%arg0: i32) -> (i32, i32) {
    %c0_i32 = arith.constant 0 : i32
    %c0_i32_0 = arith.constant 0 : i32
    %c0_i32_1 = arith.constant 0 : i32
    return %c0_i32, %c0_i32_0 : i32, i32
  }
  func.func @transform_2(%arg0: i32) -> (i32, i32) {
    %c0_i32 = arith.constant 0 : i32
    %c0_i32_0 = arith.constant 0 : i32
    %c0_i32_1 = arith.constant 0 : i32
    return %c0_i32, %c0_i32_0 : i32, i32
  }
  func.func @transform_3(%arg0: i32) -> (i32, i32) {
    %c0_i32 = arith.constant 0 : i32
    %c0_i32_0 = arith.constant 0 : i32
    %c0_i32_1 = arith.constant 0 : i32
    return %c0_i32, %c0_i32_0 : i32, i32
  }
  func.func @transform_4(%arg0: i32) -> (i32, i32) {
    %c0_i32 = arith.constant 0 : i32
    %c0_i32_0 = arith.constant 0 : i32
    %c0_i32_1 = arith.constant 0 : i32
    return %c0_i32, %c0_i32_0 : i32, i32
  }
  func.func @transform_5(%arg0: i32) -> (i32, i32) {
    %c0_i32 = arith.constant 0 : i32
    %c0_i32_0 = arith.constant 0 : i32
    %c0_i32_1 = arith.constant 0 : i32
    return %c0_i32, %c0_i32_0 : i32, i32
  }
  func.func @transform_6(%arg0: i32) -> (i32, i32) {
    %c0_i32 = arith.constant 0 : i32
    %c0_i32_0 = arith.constant 0 : i32
    %c0_i32_1 = arith.constant 0 : i32
    return %c0_i32, %c0_i32_0 : i32, i32
  }
  func.func @transform_7(%arg0: i32) -> (i32, i32) {
    %c0_i32 = arith.constant 0 : i32
    %c0_i32_0 = arith.constant 0 : i32
    %c0_i32_1 = arith.constant 0 : i32
    return %c0_i32, %c0_i32_0 : i32, i32
  }
  func.func @transform_8(%arg0: i32) -> (i32, i32) {
    %c0_i32 = arith.constant 0 : i32
    %c0_i32_0 = arith.constant 0 : i32
    %c0_i32_1 = arith.constant 0 : i32
    return %c0_i32, %c0_i32_0 : i32, i32
  }
  func.func @transform_9(%arg0: i32) -> (i32, i32) {
    %c0_i32 = arith.constant 0 : i32
    %c0_i32_0 = arith.constant 0 : i32
    return %arg0, %c0_i32 : i32, i32
  }
}

</mosaic_0001>

<bundles_post_ra>
// kernel: tpu_custom_call.1
= control target key start
LH: loop header
LB: loop body
LE: loop exit
PB: predicated region body
PF: predicated region fallthrough
CT: control target
= control target key end

     0   :  { %14 = vsyncpa [#allocation3], 0  ;;  %s760_s0 = inlined_call_operand.hbm [shape: f32[8,16], index: 0, kind: input, shape index: {}]   ;;  %s761_s1 = inlined_call_operand.hbm [shape: bf16[16,32], index: 1, kind: input, shape index: {}]   ;;  %s762_s2 = inlined_call_operand.hbm [shape: bf16[32,32], index: 2, kind: input, shape index: {}]   ;;  %s763_s3 = inlined_call_operand.hbm [shape: bf16[32,32], index: 3, kind: input, shape index: {}]   ;;  %s764_s4 = inlined_call_operand.hbm [shape: bf16[32,128], index: 4, kind: input, shape index: {}]   ;;  %s765_s5 = inlined_call_operand.vmem [shape: f32[1,32], index: 5, kind: input, shape index: {}]   ;;  %s766_s6 = inlined_call_operand.vmem [shape: f32[1,32], index: 6, kind: input, shape index: {}]   ;;  %s767_s7 = inlined_call_operand.vmem [shape: f32[1,32], index: 7, kind: input, shape index: {}]   ;;  %s768_s8 = inlined_call_operand.vmem [shape: f32[1,128], index: 8, kind: input, shape index: {}]   ;;  %s769_s9 = inlined_call_operand.hbm [shape: f32[8,128], index: 9, kind: output, shape index: {}]  }
   0x1   :  { %15 = vsyncpa [#allocation6], 0 }
   0x2   :  { %16 = vsyncpa [#allocation9], 0 }
   0x3   :  { %17 = vsyncpa [#allocation4], 0  ;;  %s597_s30 = smov [#allocation5]   ;;  %s457_s13 = scalar_lea.hbm %s761_s1, 128 }
   0x4   :  { %s33_s10 = sshll.u32 %s597_s30, 4  ;;  %p458_p0 = scmp.ne.s32.totalorder %s761_s1, %s457_s13  ;;  %s34_s10 = int_to_ptr.vmem [resolvable:$true] %s33_s10 }
   0x5   :  { %p461_p1 = scmp.lt.u32.totalorder %s457_s13, %s761_s1 }
   0x7   :  { %p463_p2 = pnand %p461_p1, %p458_p0 }
   0x9   :  { %466 = shalt.err (!%p463_p2)
}
   0xa   :  { %s467_s18 = scalar_lea.vmem %s34_s10, 128  ;;  %p472_p4 = scmp.lt.s32.totalorder %s34_s10, %s34_s10 }
   0xb   :  { %p468_p3 = scmp.ne.s32.totalorder %s34_s10, %s467_s18  ;;  %p473_p5 = scmp.lt.s32.totalorder %s467_s18, %s467_s18 }
   0xd   :  { %p474_p6 = por %p473_p5, %p472_p4 }
   0xf   :  { %p475_p7 = pnand %p474_p6, %p468_p3 }
  0x11   :  { %478 = shalt.err (!%p475_p7)
}
  0x12   :  { %s598_s19 = smov 64   ;;  %s599_s20 = smov 4  }
  0x13   :  { %39 = dma.hbm_to_vmem [thread:$0]  %s761_s1, 128, %s34_s10, [#allocation6], %s598_s19, %s598_s19, %s599_s20  }
  0x14   :  { %s600_s23 = smov [#allocation8]   ;;  %s601_s25 = smov [#allocation2]  }
  0x15   :  { %s57_s24 = sshll.u32 %s600_s23, 4  ;;  %s24_s26 = sshll.u32 %s601_s25, 4  ;;  %s58_s24 = int_to_ptr.vmem [resolvable:$true] %s57_s24  ;;  %s25_s26 = int_to_ptr.vmem [resolvable:$true] %s24_s26 }
  0x16   :  { %s479_s29 = scalar_lea.hbm %s763_s3, 256 }
  0x17   :  { %p480_p8 = scmp.ne.s32.totalorder %s763_s3, %s479_s29  ;;  %p483_p9 = scmp.lt.u32.totalorder %s479_s29, %s763_s3 }
  0x19   :  { %p485_p10 = pnand %p483_p9, %p480_p8 }
  0x1b   :  { %488 = shalt.err (!%p485_p10)
}
  0x1c   :  { %s489_s1 = scalar_lea.vmem %s58_s24, 256  ;;  %p494_p12 = scmp.lt.s32.totalorder %s58_s24, %s58_s24 }
  0x1d   :  { %p490_p11 = scmp.ne.s32.totalorder %s58_s24, %s489_s1  ;;  %p495_p13 = scmp.lt.s32.totalorder %s489_s1, %s489_s1 }
  0x1f   :  { %p496_p0 = por %p495_p13, %p494_p12 }
  0x21   :  { %p497_p1 = pnand %p496_p0, %p490_p11 }
  0x23   :  { %500 = shalt.err (!%p497_p1)
}
  0x24   :  { %63 = dma.hbm_to_vmem [thread:$0]  %s763_s3, 256, %s58_s24, [#allocation9], %s598_s19, %s598_s19, %s599_s20  }
  0x25   :  { %s501_s17 = scalar_lea.hbm %s760_s0, 128 }
  0x26   :  { %p502_p2 = scmp.ne.s32.totalorder %s760_s0, %s501_s17  ;;  %p505_p3 = scmp.lt.u32.totalorder %s501_s17, %s760_s0 }
  0x28   :  { %p507_p4 = pnand %p505_p3, %p502_p2 }
  0x2a   :  { %510 = shalt.err (!%p507_p4)
}
  0x2b   :  { %s511_s25 = scalar_lea.vmem %s25_s26, 128  ;;  %p516_p6 = scmp.lt.s32.totalorder %s25_s26, %s25_s26 }
  0x2c   :  { %p512_p5 = scmp.ne.s32.totalorder %s25_s26, %s511_s25  ;;  %p517_p7 = scmp.lt.s32.totalorder %s511_s25, %s511_s25 }
  0x2e   :  { %p518_p8 = por %p517_p7, %p516_p6 }
  0x30   :  { %p519_p9 = pnand %p518_p8, %p512_p5 }
  0x32   :  { %522 = shalt.err (!%p519_p9)
}
  0x33   :  { %27 = dma.hbm_to_vmem [thread:$0]  %s760_s0, 128, %s25_s26, [#allocation3]  }
  0x34   :  { %s602_s27 = smov [#allocation7]   ;;  %s603_s29 = smov [#allocation10]  }
  0x35   :  { %s45_s28 = sshll.u32 %s602_s27, 4  ;;  %s69_s30 = sshll.u32 %s603_s29, 4  ;;  %s46_s28 = int_to_ptr.vmem [resolvable:$true] %s45_s28  ;;  %s70_s30 = int_to_ptr.vmem [resolvable:$true] %s69_s30 }
  0x36   :  { %s523_s13 = scalar_lea.hbm %s762_s2, 256 }
  0x37   :  { %p524_p10 = scmp.ne.s32.totalorder %s762_s2, %s523_s13  ;;  %p527_p11 = scmp.lt.u32.totalorder %s523_s13, %s762_s2 }
  0x39   :  { %p529_p12 = pnand %p527_p11, %p524_p10 }
  0x3b   :  { %532 = shalt.err (!%p529_p12)
}
  0x3c   :  { %s533_s0 = scalar_lea.vmem %s46_s28, 256  ;;  %p538_p0 = scmp.lt.s32.totalorder %s46_s28, %s46_s28 }
  0x3d   :  { %p534_p13 = scmp.ne.s32.totalorder %s46_s28, %s533_s0  ;;  %p539_p1 = scmp.lt.s32.totalorder %s533_s0, %s533_s0 }
  0x3f   :  { %p540_p2 = por %p539_p1, %p538_p0 }
  0x41   :  { %p541_p3 = pnand %p540_p2, %p534_p13 }
  0x43   :  { %544 = shalt.err (!%p541_p3)
}
  0x44   :  { %51 = dma.hbm_to_vmem [thread:$0]  %s762_s2, 256, %s46_s28, [#allocation6], %s598_s19, %s598_s19, %s599_s20  }
  0x45   :  { %s545_s21 = scalar_lea.hbm %s764_s4, 256 }
  0x46   :  { %p546_p4 = scmp.ne.s32.totalorder %s764_s4, %s545_s21  ;;  %p549_p5 = scmp.lt.u32.totalorder %s545_s21, %s764_s4 }
  0x48   :  { %p551_p6 = pnand %p549_p5, %p546_p4 }
  0x4a   :  { %554 = shalt.err (!%p551_p6)
}
  0x4b   :  { %s555_s24 = scalar_lea.vmem %s70_s30, 256  ;;  %p560_p8 = scmp.lt.s32.totalorder %s70_s30, %s70_s30 }
  0x4c   :  { %p556_p7 = scmp.ne.s32.totalorder %s70_s30, %s555_s24  ;;  %p561_p9 = scmp.lt.s32.totalorder %s555_s24, %s555_s24 }
  0x4e   :  { %p562_p10 = por %p561_p9, %p560_p8 }
  0x50   :  { %p563_p11 = pnand %p562_p10, %p556_p7 }
  0x52   :  { %566 = shalt.err (!%p563_p11)
}
  0x53   :  { %75 = dma.hbm_to_vmem [thread:$0]  %s764_s4, 256, %s70_s30, [#allocation9], %s598_s19, %s598_s19, %s599_s20  }
  0x54   :  { %589 = dma.done.wait [#allocation3], 128  }
  0x55   :  { %590 = vsyncadd [#allocation3], 4294967168 }
  0x56   :  { %591 = dma.done.wait [#allocation6], 384  }
  0x57   :  { %592 = vsyncadd [#allocation6], 4294966912 }
  0x58   :  { %593 = dma.done.wait [#allocation9], 512  }
  0x59   :  { %594 = vsyncadd [#allocation9], 4294966784  ;;  %v604_v0 = vmov 0.0   ;;  %vm605_vm0 = vmmov 0   ;;  %v450_v1 = vld [vmem:[#allocation5] sm:$0xff]   ;;  %v100_v2 = vld [vmem:[#allocation2] sm:$0xff] }
  0x5a   :  { %410 = vmatprep.subr.bf16.mxu0 %v604_v0  ;;  %412 = vmatprep.mubr.msk.bf16.mxu0 %vm605_vm0, %v604_v0  ;;  %vm117_vm1 = vcmask 130048   ;;  %v104_v3 = vpack.c.bf16 %v100_v2, %v100_v2  ;;  %v451_v4 = vld [vmem:[#allocation7] sm:$0xff]   ;;  %v452_v5 = vld [vmem:[#allocation7 + $0x8] sm:$0xff]   ;;  %v453_v6 = vld [vmem:[#allocation8] sm:$0xff]   ;;  %vm186_vm2 = vcmask 261120   ;;  %s606_s11 = smov [#allocation11]  }
  0x5b   :  { %416 = vmatprep.subr.bf16.mxu1 %v604_v0  ;;  %420 = vmatprep.mubr.msk.bf16.mxu1 %vm605_vm0, %v604_v0  ;;  %v384_v7 = vld [vmem:[%s765_s5] ss:$0 sm:$0xff]  ;;  %v454_v15 = vld [vmem:[#allocation8 + $0x8] sm:$0xff]   ;;  %v455_v16 = vld [vmem:[#allocation10] sm:$0xff]   ;;  %s373_s12 = sshll.u32 %s606_s11, 4  ;;  %s374_s12 = int_to_ptr.vmem [resolvable:$true] %s373_s12 }
  0x5c   :  { %411 = vmatpush3.bf16.msra.mxu0 %v450_v1  ;;  %417 = vmatpush3.bf16.msra.mxu1 %v451_v4  ;;  %v387_v17 = vld [vmem:[%s766_s6] ss:$0 sm:$0xff]  ;;  %v456_v25 = vld [vmem:[#allocation10 + $0x8] sm:$0xff]   ;;  %p572_p13 = scmp.lt.s32.totalorder %s374_s12, %s374_s12 }
  0x5d   :  { %424 = vmatprep.subr.bf16.mxu0 %v604_v0  ;;  %418 = vmatprep.subr.bf16.mxu1 %v604_v0  ;;  %v391_v26 = vld [vmem:[%s767_s7] ss:$0 sm:$0xff]  ;;  %s567_s7 = scalar_lea.vmem %s374_s12, 128 }
  0x5e   :  { %v395_v34 = vld [vmem:[%s768_s8] ss:$0 sm:$0xff]  ;;  %p568_p12 = scmp.ne.s32.totalorder %s374_s12, %s567_s7  ;;  %p573_p0 = scmp.lt.s32.totalorder %s567_s7, %s567_s7 }
  0x5f   :  { %413 = vmatmul.mubr.msk.bf16.vlgmr.msra.gmra.mrb[0].mxu0 %vm117_vm1, %v104_v3 }
  0x60   :  { %428 = vmatprep.mubr.msk.bf16.mxu0 %vm605_vm0, %v604_v0  ;;  %419 = vmatpush3.bf16.msra.mxu1 %v452_v5  ;;  %p574_p1 = por %p573_p0, %p572_p13 }
  0x61   :  { %432 = vmatprep.subr.bf16.mxu1 %v604_v0  ;;  %425 = vmatpush3.bf16.msra.mxu0 %v453_v6 }
  0x62   :  { %426 = vmatprep.subr.bf16.mxu0 %v604_v0  ;;  %p575_p2 = pnand %p574_p1, %p568_p12 }
  0x65   :  { %427 = vmatpush3.bf16.msra.mxu0 %v454_v15 }
 0x132   :  { %v155_v8 = vpop.f32.mrb[0].mxu0 }
 0x133   :  { %v156_v9 = vadd.f32 %v384_v7, %v155_v8  ;;  %v414_v10 = vpop.f32.mrb[1].mxu0 }
 0x134   :  { %v158_v11 = vpop.f32.mrb[2].mxu0 }
 0x135   :  { %v161_v12 = vmax.f32 %v156_v9, 0.0  ;;  %v415_v13 = vpop.f32.mrb[3].mxu0 }
 0x137   :  { %v167_v14 = vpack.c.bf16 %v161_v12, %v161_v12 }
 0x139   :  { %421 = vmatmul.mubr.msk.bf16.vlgmr.msra.gmra.mrb[0].mxu1 %vm186_vm2, %v167_v14 }
 0x13a   :  { %436 = vmatprep.mubr.msk.bf16.mxu1 %vm605_vm0, %v604_v0  ;;  %433 = vmatpush3.bf16.msra.mxu1 %v455_v16 }
 0x13b   :  { %434 = vmatprep.subr.bf16.mxu1 %v604_v0 }
 0x13e   :  { %435 = vmatpush3.bf16.msra.mxu1 %v456_v25 }
 0x20c   :  { %v224_v18 = vpop.f32.mrb[0].mxu1 }
 0x20d   :  { %v225_v19 = vadd.f32 %v387_v17, %v224_v18  ;;  %v422_v20 = vpop.f32.mrb[1].mxu1 }
 0x20e   :  { %v227_v21 = vpop.f32.mrb[2].mxu1 }
 0x20f   :  { %v230_v22 = vmax.f32 %v225_v19, 0.0  ;;  %v423_v23 = vpop.f32.mrb[3].mxu1 }
 0x211   :  { %v236_v24 = vpack.c.bf16 %v230_v22, %v230_v22 }
 0x213   :  { %429 = vmatmul.mubr.msk.bf16.vlgmr.msra.gmra.mrb[4].mxu0 %vm186_vm2, %v236_v24 }
 0x2e6   :  { %v292_v27 = vpop.f32.mrb[4].mxu0 }
 0x2e7   :  { %v293_v28 = vadd.f32 %v391_v26, %v292_v27  ;;  %v430_v29 = vpop.f32.mrb[5].mxu0 }
 0x2e8   :  { %v295_v30 = vpop.f32.mrb[6].mxu0 }
 0x2e9   :  { %v298_v31 = vmax.f32 %v293_v28, 0.0  ;;  %v431_v32 = vpop.f32.mrb[7].mxu0 }
 0x2eb   :  { %v304_v33 = vpack.c.bf16 %v298_v31, %v298_v31 }
 0x2ed   :  { %437 = vmatmul.mubr.msk.bf16.vlgmr.msra.gmra.mrb[4].mxu1 %vm186_vm2, %v304_v33 }
 0x3c0   :  { %v360_v35 = vpop.f32.mrb[4].mxu1 }
 0x3c1   :  { %v361_v36 = vadd.f32 %v395_v34, %v360_v35  ;;  %v438_v37 = vpop.f32.mrb[5].mxu1 }
 0x3c2   :  { %v363_v38 = vpop.f32.mrb[6].mxu1 }
 0x3c3   :  { %366 = vst [vmem:[#allocation11] sm:$0xff] %v361_v36  ;;  %v439_v39 = vpop.f32.mrb[7].mxu1 }
 0x3c4   :  { %578 = shalt.err (!%p575_p2)
}
 0x3c5   :  { %s579_s8 = scalar_lea.hbm %s769_s9, 128 }
 0x3c6   :  { %p580_p3 = scmp.ne.s32.totalorder %s769_s9, %s579_s8  ;;  %p583_p4 = scmp.lt.u32.totalorder %s579_s8, %s769_s9 }
 0x3c8   :  { %p585_p5 = pnand %p583_p4, %p580_p3 }
 0x3ca   :  { %588 = shalt.err (!%p585_p5)
}
 0x3cb   :  { %376 = dma.vmem_to_hbm [thread:$0]  %s374_s12, 128, %s769_s9, [#allocation4]  }
 0x3cc   :  { %595 = dma.done.wait [#allocation4], 128  }
 0x3cd   :  { %596 = vsyncadd [#allocation4], 4294967168 }
 0x3ce   :  { %380 = vsyncpa [#allocation3], 1 }
 0x3cf   :  { %381 = vsyncpa [#allocation6], 1 }
 0x3d0   :  { %382 = vsyncpa [#allocation9], 1 }
 0x3d1   :  { %383 = vsyncpa [#allocation4], 1 }

</bundles_post_ra>
